<compile_context>
chip_gen: v7x
topology: tpu7x:2x2x1
jax: 0.10.0
libtpu: 0.0.40
codegen_flags: <defaults>
</compile_context>

<pallas_src>
import functools

import jax
import jax.numpy as jnp
from jax import lax
from jax.experimental import pallas as pl
from jax.experimental.pallas import tpu as pltpu


def _round_up(a, b):
    return ((a + b - 1) // b) * b


# Python float, NOT a jnp scalar: a jnp.float32(...) closed over by the kernel
# body is a captured constant, which pallas_call rejects.  Logits stay f32, so
# -1e30 is safe (and bf16 shares f32's exponent range, so the bf16 adjacency
# bias can hold it too).
NEG = -1e30

# Scoped-VMEM budget: big enough for the resident weight block + deep
# pipelining on v5e/v6e (128 MiB physical), small enough to leave headroom on
# v7x (64 MiB physical per TensorCore).
VMEM_LIMIT = 48 * 1024 * 1024


# ----------------------------------------------------------------------------
# Kernel A: fused projection  (xp | attention alphas | skip + biases)
# ----------------------------------------------------------------------------
def proj_kernel(x_ref, w_ref, xp_ref, alpha_ref, skip_ref, *, hc_pad, alpha_pad):
    # bf16 x bf16 -> f32 accumulation on the MXU.
    proj = jnp.dot(x_ref[...], w_ref[...], preferred_element_type=jnp.float32)
    # splits land on 128-aligned lane boundaries -> no relayout copies
    xp_ref[...] = proj[:, :hc_pad].astype(xp_ref.dtype)         # stored bf16
    alpha_ref[...] = proj[:, hc_pad:hc_pad + alpha_pad]
    skip_ref[...] = proj[:, hc_pad + alpha_pad:]


# ----------------------------------------------------------------------------
# Kernel B: masked softmax attention + aggregation (+ skip + activation)
# ----------------------------------------------------------------------------
def attn_agg_kernel(adjb_ref, asrcT_ref, adst_ref, xp_ref, skip_ref, out_ref,
                    m_sc, l_sc, acc_sc, *,
                    heads, c_pad, c_valid, concat, apply_elu, apply_logsoftmax):
    s_idx = pl.program_id(1)

    @pl.when(s_idx == 0)
    def _init():
        m_sc[...] = jnp.full(m_sc.shape, NEG, dtype=m_sc.dtype)
        l_sc[...] = jnp.zeros(l_sc.shape, dtype=l_sc.dtype)
        acc_sc[...] = jnp.zeros(acc_sc.shape, dtype=acc_sc.dtype)

    # Additive adjacency bias (0 on an edge, -1e30 otherwise), streamed as
    # bf16 and widened ONCE per tile: replaces the per-head compare+select of
    # a mask formulation with a single VPU add per head.
    bias = adjb_ref[...].astype(jnp.float32)      # [T_DST, T_SRC]
    a_srcT = asrcT_ref[...]                       # [8, T_SRC]  (rows 0..H-1)
    a_dst = adst_ref[...]                         # [T_DST, 128]
    xp = xp_ref[...]                              # [T_SRC, H*C_pad]  bf16

    for h in range(heads):                        # static unroll (small H)
        # logits: e[d, s] = alpha_dst[d, h] + alpha_src[s, h]  (pure VPU,
        # no M=1 / N=1 MXU matmuls)
        e = a_dst[:, heads + h:heads + h + 1] + a_srcT[h:h + 1, :]
        e = jnp.maximum(e, 0.2 * e)               # LeakyReLU(0.2): 1 VPU op
        e = e + bias                              # mask as additive bias

        # online (flash-style) softmax update; m/l/acc bookkeeping in f32.
        # TODO(synk): on v6e/v7x a bf16 exp (EUP bf16) would relieve the EUP
        # slot; kept f32 here for portability (v5e has no bf16 EUP).
        m_prev = m_sc[h]                                            # [T_DST, 1]
        m_new = jnp.maximum(m_prev, jnp.max(e, axis=-1, keepdims=True))
        corr = jnp.exp(m_prev - m_new)
        p = jnp.exp(e - m_new)                                      # [T_DST, T_SRC]
        l_sc[h] = corr * l_sc[h] + jnp.sum(p, axis=-1, keepdims=True)
        acc_sc[:, h * c_pad:(h + 1) * c_pad] = (
            corr * acc_sc[:, h * c_pad:(h + 1) * c_pad]
            + jnp.dot(p.astype(xp.dtype), xp[:, h * c_pad:(h + 1) * c_pad],
                      preferred_element_type=jnp.float32))
        m_sc[h] = m_new

    @pl.when(s_idx == pl.num_programs(1) - 1)
    def _finalize():
        # Exact reciprocal: runs once per dst tile so it is cheap, and avoids
        # the ~1e-3 error of the approximate EUP reciprocal.  eps guard so
        # fully-masked (padded) rows cannot 0/0 -> NaN.
        # NOTE: online-softmax correctness relies on every *kept* dst row
        # having at least one unmasked edge (guaranteed by self-loops); rows
        # without edges only exist in padding, which the wrapper slices off.
        inv = [1.0 / jnp.maximum(l_sc[h], 1e-12) for h in range(heads)]
        if concat:
            for h in range(heads):
                acc_sc[:, h * c_pad:(h + 1) * c_pad] = (
                    acc_sc[:, h * c_pad:(h + 1) * c_pad] * inv[h])
            y = acc_sc[...] + skip_ref[...]       # bias already folded into skip
        else:
            y = acc_sc[:, 0:c_pad] * inv[0]
            for h in range(1, heads):
                y = y + acc_sc[:, h * c_pad:(h + 1) * c_pad] * inv[h]
            y = y * (1.0 / heads) + skip_ref[...]

        if apply_elu:
            y = jnp.where(y > 0, y, jnp.exp(y) - 1.0)   # ELU(alpha=1)
        if apply_logsoftmax:
            # exclude padded feature columns from the softmax
            col = lax.broadcasted_iota(jnp.int32, y.shape, 1)
            y = jnp.where(col < c_valid, y, NEG)
            m = jnp.max(y, axis=-1, keepdims=True)
            z = y - m
            y = z - jnp.log(jnp.sum(jnp.exp(z), axis=-1, keepdims=True))

        out_ref[...] = y


# ----------------------------------------------------------------------------
# One GAT layer (+ skip linear + activation): padding, param packing, 2 kernels
# ----------------------------------------------------------------------------
def gat_layer(x, adj_mask, params, *, heads, out_channels,
              concat, apply_elu, apply_logsoftmax):
    N_src, f_in = x.shape
    N_dst = adj_mask.shape[0]
    C = out_channels
    # TODO(synk): with out_channels << 128 this per-head 128-padding inflates
    # xp/acc/out HBM traffic and MXU N-work; at real sizes pack heads*C into a
    # single jointly 128-rounded block instead.
    C_pad = _round_up(C, 128)                 # per-head 128-aligned block
    HC_pad = heads * C_pad
    ALPHA_PAD = 128
    out_dim = heads * C if concat else C
    OUT_pad = heads * C_pad if concat else C_pad
    SRC_ROWS = _round_up(max(heads, 1), 8)    # alpha_src^T row padding
    assert 2 * heads <= ALPHA_PAD

    # --- tile selection -------------------------------------------------------
    # dst tile: 256 fills the 256-wide MXU on v6e/v7x and halves xp re-reads,
    # but only when >=2 dst tiles remain (keeps both v7x TensorCores busy on
    # the "parallel" axis); otherwise 128 (v5e MXU width) or the small-N case.
    if N_dst >= 512:
        TILE_DST = 256
    elif N_dst >= 128:
        TILE_DST = 128
    else:
        TILE_DST = min(128, max(16, pl.next_power_of_2(N_dst)))
    # src tile: lane-dense multiple of 128; 512 with bf16 xp/adj is VMEM-safe
    # on v7x (64 MiB).  TODO(synk): sweep to 1024-2048 on v5e/v6e (128 MiB).
    TILE_SRC = 128 * min(4, pl.cdiv(N_src, 128))
    N_dst_pad = _round_up(N_dst, TILE_DST)
    N_src_pad = max(_round_up(N_src, TILE_SRC), _round_up(N_dst_pad, TILE_SRC))
    F_pad = _round_up(f_in + 1, 128)          # +1 -> ones column for bias folding
    n_dst_tiles = N_dst_pad // TILE_DST
    n_src_tiles = N_src_pad // TILE_SRC

    # ---------------- parameter packing (layout plumbing, wrapper side) -----
    W = params["w"]                            # [f_in, heads*C]
    att_src = params["att_src"]                # [heads, C]
    att_dst = params["att_dst"]                # [heads, C]
    W_skip = params["w_skip"]                  # [f_in, out_dim]
    bias_tot = params["bias"] + params["b_skip"]   # [1, out_dim]

    # alpha = xp @ A  ==  x @ (W @ A): fold the per-head attention reductions
    # into the single projection matmul (no tiny M=1 MXU ops in the kernel).
    A = jnp.zeros((heads * C, 2 * heads), jnp.float32)
    for h in range(heads):
        A = A.at[h * C:(h + 1) * C, h].set(att_src[h])
        A = A.at[h * C:(h + 1) * C, heads + h].set(att_dst[h])
    W_alpha = W @ A                            # [f_in, 2*heads]

    TOT = HC_pad + ALPHA_PAD + OUT_pad
    big_w = jnp.zeros((F_pad, TOT), jnp.float32)
    for h in range(heads):                     # projection, per-head blocks
        big_w = big_w.at[:f_in, h * C_pad:h * C_pad + C].set(W[:, h * C:(h + 1) * C])
    big_w = big_w.at[:f_in, HC_pad:HC_pad + 2 * heads].set(W_alpha)
    off = HC_pad + ALPHA_PAD                   # skip weights + folded bias row
    if concat:
        for h in range(heads):
            big_w = big_w.at[:f_in, off + h * C_pad:off + h * C_pad + C].set(
                W_skip[:, h * C:(h + 1) * C])
            big_w = big_w.at[f_in, off + h * C_pad:off + h * C_pad + C].set(
                bias_tot[0, h * C:(h + 1) * C])
    else:
        big_w = big_w.at[:f_in, off:off + C].set(W_skip)
        big_w = big_w.at[f_in, off:off + C].set(bias_tot[0])
    big_w = big_w.astype(jnp.bfloat16)         # bf16 MXU operand

    # ---------------- input padding ------------------------------------------
    x_pad = jnp.zeros((N_src_pad, F_pad), jnp.float32)
    x_pad = x_pad.at[:N_src, :f_in].set(x)
    x_pad = x_pad.at[:, f_in].set(1.0)                      # ones col -> bias
    x_pad = x_pad.astype(jnp.bfloat16)                      # bf16 MXU operand

    # additive adjacency bias: 0 on an edge, -1e30 otherwise (bf16 -> 2-byte
    # stream of the dominant O(N_dst*N_src) term; padding rows/cols masked).
    adj_bias = jnp.full((N_dst_pad, N_src_pad), NEG, jnp.float32)
    adj_bias = adj_bias.at[:N_dst, :N_src].set(jnp.where(adj_mask > 0, 0.0, NEG))
    adj_bias = adj_bias.astype(jnp.bfloat16)

    # ---------------- kernel A: fused projection ----------------------------
    # TODO(synk): at realistic sizes mark the resident W block with
    # pipeline_mode=pl.Buffered(1) and/or add a K grid axis + f32 accumulator
    # so 2x the (F_pad, TOT) block never exceeds v7x's 64 MiB VMEM.
    xp, alpha, skip = pl.pallas_call(
        functools.partial(proj_kernel, hc_pad=HC_pad, alpha_pad=ALPHA_PAD),
        out_shape=(jax.ShapeDtypeStruct((N_src_pad, HC_pad), jnp.bfloat16),
                   jax.ShapeDtypeStruct((N_src_pad, ALPHA_PAD), jnp.float32),
                   jax.ShapeDtypeStruct((N_src_pad, OUT_pad), jnp.float32)),
        grid=(n_src_tiles,),
        in_specs=[pl.BlockSpec((TILE_SRC, F_pad), lambda i: (i, 0)),
                  pl.BlockSpec((F_pad, TOT), lambda i: (0, 0))],     # W resident
        out_specs=(pl.BlockSpec((TILE_SRC, HC_pad), lambda i: (i, 0)),
                   pl.BlockSpec((TILE_SRC, ALPHA_PAD), lambda i: (i, 0)),
                   pl.BlockSpec((TILE_SRC, OUT_pad), lambda i: (i, 0))),
        compiler_params=pltpu.CompilerParams(
            dimension_semantics=("parallel",),
            vmem_limit_bytes=VMEM_LIMIT),
        cost_estimate=pl.CostEstimate(
            flops=2 * N_src_pad * F_pad * TOT,
            transcendentals=0,
            bytes_accessed=2 * (N_src_pad * F_pad + F_pad * TOT + N_src_pad * HC_pad)
                           + 4 * N_src_pad * (ALPHA_PAD + OUT_pad)),
    )(x_pad, big_w)

    # source-side alphas, transposed to a lane-dense row layout (tiny, one-off)
    a_srcT = jnp.zeros((SRC_ROWS, N_src_pad), jnp.float32)
    a_srcT = a_srcT.at[:heads, :].set(alpha[:, :heads].T)

    # ---------------- kernel B: attention + aggregation ---------------------
    kernel_b = functools.partial(
        attn_agg_kernel, heads=heads, c_pad=C_pad, c_valid=C, concat=concat,
        apply_elu=apply_elu, apply_logsoftmax=apply_logsoftmax)

    out_pad = pl.pallas_call(
        kernel_b,
        out_shape=jax.ShapeDtypeStruct((N_dst_pad, OUT_pad), jnp.float32),
        grid=(n_dst_tiles, n_src_tiles),
        in_specs=[pl.BlockSpec((TILE_DST, TILE_SRC), lambda d, s: (d, s)),     # adj bias (bf16)
                  pl.BlockSpec((SRC_ROWS, TILE_SRC), lambda d, s: (0, s)),     # alpha_src^T
                  pl.BlockSpec((TILE_DST, ALPHA_PAD), lambda d, s: (d, 0)),    # alpha (dst rows)
                  pl.BlockSpec((TILE_SRC, HC_pad), lambda d, s: (s, 0)),       # xp (bf16)
                  pl.BlockSpec((TILE_DST, OUT_pad), lambda d, s: (d, 0))],     # skip (+bias)
        out_specs=pl.BlockSpec((TILE_DST, OUT_pad), lambda d, s: (d, 0)),
        scratch_shapes=[pltpu.VMEM((heads, TILE_DST, 1), jnp.float32),   # running max
                        pltpu.VMEM((heads, TILE_DST, 1), jnp.float32),   # running sum
                        pltpu.VMEM((TILE_DST, heads * C_pad), jnp.float32)],  # acc
        compiler_params=pltpu.CompilerParams(
            dimension_semantics=("parallel", "arbitrary"),
            vmem_limit_bytes=VMEM_LIMIT),
        cost_estimate=pl.CostEstimate(
            flops=2 * N_dst_pad * N_src_pad * heads * C_pad
                  + 8 * N_dst_pad * N_src_pad * heads,
            transcendentals=N_dst_pad * N_src_pad * heads,
            bytes_accessed=2 * N_dst_pad * N_src_pad
                           + 2 * n_dst_tiles * N_src_pad * HC_pad
                           + 4 * n_dst_tiles * N_src_pad * SRC_ROWS
                           + 4 * N_dst_pad * (ALPHA_PAD + 2 * OUT_pad)),
    )(adj_bias, a_srcT, alpha, xp, skip)

    # strip padding (and re-gather per-head 128-aligned blocks for concat)
    if concat:
        out = jnp.concatenate(
            [out_pad[:N_dst, h * C_pad:h * C_pad + C] for h in range(heads)], axis=1)
    else:
        out = out_pad[:N_dst, :C]
    return out


# ----------------------------------------------------------------------------
# ScaleGAT forward (Pallas) and pure-JAX reference
# ----------------------------------------------------------------------------
def scale_gat_forward(x, n_id, adj_masks, layer_params, *, heads, num_layers):
    del n_id  # TODO(synk): History.pull/push is identity in eval mode
    for i, (mask, p) in enumerate(zip(adj_masks, layer_params)):
        last = (i == num_layers - 1)
        x = gat_layer(x, mask, p, heads=heads, out_channels=p["out_channels"],
                      concat=not last, apply_elu=not last, apply_logsoftmax=last)
        # TODO(synk): dropout(p=0.5) skipped (eval mode / identity)
    return x


def scale_gat_forward_ref(x, adj_masks, layer_params, *, heads, num_layers):
    for i, (mask, p) in enumerate(zip(adj_masks, layer_params)):
        last = (i == num_layers - 1)
        C = p["out_channels"]
        xp = x @ p["w"]
        N_dst = mask.shape[0]
        xt = xp[:N_dst]
        outs = []
        for h in range(heads):
            xph = xp[:, h * C:(h + 1) * C]
            xth = xt[:, h * C:(h + 1) * C]
            a_s = (xph * p["att_src"][h]).sum(-1)
            a_d = (xth * p["att_dst"][h]).sum(-1)
            e = a_d[:, None] + a_s[None, :]
            e = jnp.where(e > 0, e, 0.2 * e)
            e = jnp.where(mask > 0, e, -1e30)
            e = e - e.max(-1, keepdims=True)
            pr = jnp.exp(e) * mask
            pr = pr / pr.sum(-1, keepdims=True)
            outs.append(pr @ xph)
        if not last:
            agg = jnp.concatenate(outs, -1)
        else:
            agg = sum(outs) / heads
        y = agg + p["bias"] + x[:N_dst] @ p["w_skip"] + p["b_skip"]
        if not last:
            y = jnp.where(y > 0, y, jnp.exp(y) - 1.0)
        else:
            y = y - jax.scipy.special.logsumexp(y, axis=-1, keepdims=True)
        x = y
    return x


# ----------------------------------------------------------------------------
# Deterministic parameter / input construction
# ----------------------------------------------------------------------------
def glorot(key, shape):
    fan_in, fan_out = shape[0], shape[-1]
    lim = (6.0 / (fan_in + fan_out)) ** 0.5
    return jax.random.uniform(key, shape, jnp.float32, -lim, lim)


def make_layer_params(key, in_dim, out_channels, heads, concat):
    out_dim = heads * out_channels if concat else out_channels
    ks = jax.random.split(key, 6)
    return {
        "w": glorot(ks[0], (in_dim, heads * out_channels)),
        "att_src": glorot(ks[1], (heads, out_channels)),
        "att_dst": glorot(ks[2], (heads, out_channels)),
        "bias": jnp.zeros((1, out_dim), jnp.float32),
        "w_skip": glorot(ks[3], (in_dim, out_dim)),
        "b_skip": 0.01 * glorot(ks[4], (1, out_dim)),
        "out_channels": out_channels,
    }


def _bf16_round(t):
    # Round to bf16-representable values so the kernel's bf16 MXU operands and
    # the f32 reference see identical inputs (removes the dominant operand-
    # rounding component of the comparison error).
    return t.astype(jnp.bfloat16).astype(jnp.float32)


if __name__ == "__main__":
    # ScaleGAT(in_channels=8, hidden_channels=8, out_channels=4,
    #          num_layers=2, heads=2)
    in_channels, hidden_channels, out_channels = 8, 8, 4
    num_layers, heads = 2, 2

    # neighbor-sampled sizes per layer: N_src -> N_dst (nested)
    N0_src, N0_dst = 16, 8
    N1_src, N1_dst = 8, 4

    key = jax.random.PRNGKey(0)
    kx, km0, km1, kp0, kp1 = jax.random.split(key, 5)

    x = _bf16_round(jax.random.normal(kx, (N0_src, in_channels), jnp.float32))
    n_id = jnp.arange(N0_src, dtype=jnp.int32)

    # dense adjacency masks (dst x src), diagonal = self-loops
    m0 = (jax.random.uniform(km0, (N0_dst, N0_src)) < 0.4).astype(jnp.float32)
    m0 = jnp.maximum(m0, jnp.eye(N0_dst, N0_src, dtype=jnp.float32))
    m1 = (jax.random.uniform(km1, (N1_dst, N1_src)) < 0.4).astype(jnp.float32)
    m1 = jnp.maximum(m1, jnp.eye(N1_dst, N1_src, dtype=jnp.float32))
    adj_masks = [m0, m1]

    layer_params = [
        make_layer_params(kp0, in_channels, hidden_channels, heads, concat=True),
        make_layer_params(kp1, heads * hidden_channels, out_channels, heads,
                          concat=False),
    ]
    # bf16-representable parameters (same reason as for x)
    for p in layer_params:
        for k in ("w", "att_src", "att_dst", "w_skip", "b_skip", "bias"):
            p[k] = _bf16_round(p[k])

    out = scale_gat_forward(x, n_id, adj_masks, layer_params,
                            heads=heads, num_layers=num_layers)
    out = jax.block_until_ready(out)

    ref = scale_gat_forward_ref(x, adj_masks, layer_params,
                                heads=heads, num_layers=num_layers)
    assert out.shape == (N1_dst, out_channels)
    # tolerance covers the bf16 MXU path in the kernel (bf16-rounded W@A
    # attention columns, bf16-stored xp, bf16 p for the aggregation matmul)
    # versus the all-f32 reference, compounded across two layers.
    assert jnp.allclose(out, ref, atol=5e-2, rtol=5e-2), (out, ref)
    assert bool(jnp.all(jnp.isfinite(out)))

    print("KERNEL_OK")
</pallas_src>

<mosaic_0001>
module attributes {stable_mosaic.version = 11 : i64} {
  func.func @proj_kernel(%arg0: i32, %arg1: memref<128x128xbf16, #tpu.memory_space<vmem>>, %arg2: memref<128x640xbf16, #tpu.memory_space<vmem>>, %arg3: memref<128x256xbf16, #tpu.memory_space<vmem>>, %arg4: memref<128x128xf32, #tpu.memory_space<vmem>>, %arg5: memref<128x256xf32, #tpu.memory_space<vmem>>) attributes {dimension_semantics = [#tpu.dimension_semantics<parallel>], iteration_bounds = array<i64: 1>, scalar_prefetch = 0 : i64, scratch_operands = 0 : i64, tpu.core_type = #tpu.core_type<tc>, window_params = [{transform_indices = @transform_0, window_bounds = array<i64: 128, 128>}, {pipeline_mode = #tpu.pipeline_mode<synchronous>, transform_indices = @transform_1, window_bounds = array<i64: 128, 640>}, {transform_indices = @transform_2, window_bounds = array<i64: 128, 256>}, {transform_indices = @transform_3, window_bounds = array<i64: 128, 128>}, {transform_indices = @transform_4, window_bounds = array<i64: 128, 256>}]} {
    %c0 = arith.constant 0 : index
    %c0_0 = arith.constant 0 : index
    %0 = vector.load %arg1[%c0, %c0_0] : memref<128x128xbf16, #tpu.memory_space<vmem>>, vector<128x128xbf16>
    %c0_1 = arith.constant 0 : index
    %c0_2 = arith.constant 0 : index
    %1 = vector.load %arg2[%c0_1, %c0_2] : memref<128x640xbf16, #tpu.memory_space<vmem>>, vector<128x640xbf16>
    %cst = arith.constant dense<0.000000e+00> : vector<128x640xf32>
    %2 = tpu.matmul %0, %1, %cst {dimension_numbers = #tpu.dot_dimension_numbers<[1], [0], [0], [1], [0, 0, 1, 1], [], []>} : vector<128x128xbf16>, vector<128x640xbf16>, vector<128x640xf32> -> vector<128x640xf32>
    %3 = vector.extract_strided_slice %2 {offsets = [0, 0], sizes = [128, 256], strides = [1, 1]} : vector<128x640xf32> to vector<128x256xf32>
    %4 = arith.truncf %3 : vector<128x256xf32> to vector<128x256xbf16>
    %c0_3 = arith.constant 0 : index
    %c0_4 = arith.constant 0 : index
    %5 = vector.load %arg3[%c0_3, %c0_4] : memref<128x256xbf16, #tpu.memory_space<vmem>>, vector<128x256xbf16>
    tpu.vector_store %arg3[%c0_3, %c0_4], %4 {strides = array<i32>} : memref<128x256xbf16, #tpu.memory_space<vmem>>, vector<128x256xbf16>,
    %6 = vector.extract_strided_slice %2 {offsets = [0, 256], sizes = [128, 128], strides = [1, 1]} : vector<128x640xf32> to vector<128x128xf32>
    %c0_5 = arith.constant 0 : index
    %c0_6 = arith.constant 0 : index
    %7 = vector.load %arg4[%c0_5, %c0_6] : memref<128x128xf32, #tpu.memory_space<vmem>>, vector<128x128xf32>
    tpu.vector_store %arg4[%c0_5, %c0_6], %6 {strides = array<i32>} : memref<128x128xf32, #tpu.memory_space<vmem>>, vector<128x128xf32>,
    %8 = vector.extract_strided_slice %2 {offsets = [0, 384], sizes = [128, 256], strides = [1, 1]} : vector<128x640xf32> to vector<128x256xf32>
    %c0_7 = arith.constant 0 : index
    %c0_8 = arith.constant 0 : index
    %9 = vector.load %arg5[%c0_7, %c0_8] : memref<128x256xf32, #tpu.memory_space<vmem>>, vector<128x256xf32>
    tpu.vector_store %arg5[%c0_7, %c0_8], %8 {strides = array<i32>} : memref<128x256xf32, #tpu.memory_space<vmem>>, vector<128x256xf32>,
    return
  }
  func.func @transform_0(%arg0: i32) -> (i32, i32) {
    %c0_i32 = arith.constant 0 : i32
    %c0_i32_0 = arith.constant 0 : i32
    return %arg0, %c0_i32 : i32, i32
  }
  func.func @transform_1(%arg0: i32) -> (i32, i32) {
    %c0_i32 = arith.constant 0 : i32
    %c0_i32_0 = arith.constant 0 : i32
    %c0_i32_1 = arith.constant 0 : i32
    return %c0_i32, %c0_i32_0 : i32, i32
  }
  func.func @transform_2(%arg0: i32) -> (i32, i32) {
    %c0_i32 = arith.constant 0 : i32
    %c0_i32_0 = arith.constant 0 : i32
    return %arg0, %c0_i32 : i32, i32
  }
  func.func @transform_3(%arg0: i32) -> (i32, i32) {
    %c0_i32 = arith.constant 0 : i32
    %c0_i32_0 = arith.constant 0 : i32
    return %arg0, %c0_i32 : i32, i32
  }
  func.func @transform_4(%arg0: i32) -> (i32, i32) {
    %c0_i32 = arith.constant 0 : i32
    %c0_i32_0 = arith.constant 0 : i32
    return %arg0, %c0_i32 : i32, i32
  }
}

</mosaic_0001>

<bundles_post_ra>
// kernel: tpu_custom_call.1
= control target key start
LH: loop header
LB: loop body
LE: loop exit
PB: predicated region body
PF: predicated region fallthrough
CT: control target
= control target key end

     0   :  { %10 = vsyncpa [#allocation3], 0  ;;  %s1376_s0 = inlined_call_operand.hbm [shape: bf16[128,128], index: 0, kind: input, shape index: {}]   ;;  %s1377_s1 = inlined_call_operand.hbm [shape: bf16[128,640], index: 1, kind: input, shape index: {}]   ;;  %s1378_s2 = inlined_call_operand.hbm [shape: bf16[128,256], index: 2, kind: output, shape index: {0}]   ;;  %s1379_s3 = inlined_call_operand.hbm [shape: f32[128,128], index: 3, kind: output, shape index: {1}]   ;;  %s1380_s4 = inlined_call_operand.hbm [shape: f32[128,256], index: 4, kind: output, shape index: {2}]  }
   0x1   :  { %11 = vsyncpa [#allocation6], 0 }
   0x2   :  { %12 = vsyncpa [#allocation4], 0 }
   0x3   :  { %13 = vsyncpa [#allocation9], 0  ;;  %s1237_s15 = smov [#allocation2]   ;;  %s1119_s19 = scalar_lea.hbm %s1376_s0, 1024 }
   0x4   :  { %s19_s16 = sshll.u32 %s1237_s15, 4  ;;  %p1120_p0 = scmp.ne.s32.totalorder %s1376_s0, %s1119_s19  ;;  %s20_s16 = int_to_ptr.vmem [resolvable:$true] %s19_s16 }
   0x5   :  { %p1123_p1 = scmp.lt.u32.totalorder %s1119_s19, %s1376_s0 }
   0x7   :  { %p1125_p2 = pnand %p1123_p1, %p1120_p0 }
   0x9   :  { %1128 = shalt.err (!%p1125_p2)
}
   0xa   :  { %s1129_s24 = scalar_lea.vmem %s20_s16, 1024  ;;  %p1134_p4 = scmp.lt.s32.totalorder %s20_s16, %s20_s16 }
   0xb   :  { %p1130_p3 = scmp.ne.s32.totalorder %s20_s16, %s1129_s24  ;;  %p1135_p5 = scmp.lt.s32.totalorder %s1129_s24, %s1129_s24 }
   0xd   :  { %p1136_p6 = por %p1135_p5, %p1134_p4 }
   0xf   :  { %p1137_p7 = pnand %p1136_p6, %p1130_p3 }
  0x11   :  { %1140 = shalt.err (!%p1137_p7)
}
  0x12   :  { %s1238_s25 = smov 64   ;;  %s1239_s26 = smov 4  }
  0x13   :  { %25 = dma.hbm_to_vmem [thread:$0]  %s1376_s0, 1024, %s20_s16, [#allocation3], %s1238_s25, %s1238_s25, %s1239_s26  }
  0x14   :  { %s1240_s29 = smov [#allocation5]   ;;  %s1141_s7 = scalar_lea.hbm %s1377_s1, 5120 }
  0x15   :  { %s31_s30 = sshll.u32 %s1240_s29, 4  ;;  %p1142_p8 = scmp.ne.s32.totalorder %s1377_s1, %s1141_s7  ;;  %s32_s30 = int_to_ptr.vmem [resolvable:$true] %s31_s30 }
  0x16   :  { %p1145_p9 = scmp.lt.u32.totalorder %s1141_s7, %s1377_s1 }
  0x18   :  { %p1147_p10 = pnand %p1145_p9, %p1142_p8 }
  0x1a   :  { %1150 = shalt.err (!%p1147_p10)
}
  0x1b   :  { %s1151_s12 = scalar_lea.vmem %s32_s30, 5120  ;;  %p1156_p12 = scmp.lt.s32.totalorder %s32_s30, %s32_s30 }
  0x1c   :  { %p1152_p11 = scmp.ne.s32.totalorder %s32_s30, %s1151_s12  ;;  %p1157_p13 = scmp.lt.s32.totalorder %s1151_s12, %s1151_s12 }
  0x1e   :  { %p1158_p0 = por %p1157_p13, %p1156_p12 }
  0x20   :  { %p1159_p1 = pnand %p1158_p0, %p1152_p11 }
  0x22   :  { %1162 = shalt.err (!%p1159_p1)
}
  0x23   :  { %s1241_s0 = smov 320   ;;  %s1242_s13 = smov 20  }
  0x24   :  { %37 = dma.hbm_to_vmem [thread:$0]  %s1377_s1, 5120, %s32_s30, [#allocation6], %s1241_s0, %s1241_s0, %s1242_s13  }
  0x25   :  { %1229 = dma.done.wait [#allocation3], 1024  }
  0x26   :  { %1230 = vsyncadd [#allocation3], 4294966272 }
  0x27   :  { %1231 = dma.done.wait [#allocation6], 5120  }
  0x28   :  { %1232 = vsyncadd [#allocation6], 4294962176  ;;  %v1243_v0 = vmov 0   ;;  %v1055_v1 = vld [vmem:[#allocation5 + $0x4] ss:$20 sps:$4 sm:$0xff]   ;;  %v1308_v37 = vld [vmem:[#allocation2 + $0x8] sm:$0xff]  }
  0x29   :  { %397 = vmatprep.mubr.bf16.mxu0 %v1243_v0  ;;  %510 = vmatprep.mubr.bf16.mxu1 %v1243_v0  ;;  %v1057_v2 = vld [vmem:[#allocation5 + $0xc] ss:$20 sps:$4 sm:$0xff]   ;;  %v1060_v4 = vld [vmem:[#allocation5 + $0x8] ss:$20 sps:$4 sm:$0xff]   ;;  %v1066_v8 = vld [vmem:[#allocation5 + $0x30] ss:$20 sps:$4 sm:$0xff]  }
  0x2a   :  { %365 = vmatprep.subr.bf16.mxu0 %v1055_v1  ;;  %v1059_v3 = vld [vmem:[#allocation5] ss:$20 sps:$4 sm:$0xff]   ;;  %478 = vmatprep.subr.bf16.mxu1 %v1057_v2  ;;  %v1065_v7 = vld [vmem:[#allocation5 + $0x28] ss:$20 sps:$4 sm:$0xff]   ;;  %v1071_v11 = vld [vmem:[#allocation5 + $0x50] ss:$20 sps:$4 sm:$0xff]  }
  0x2b   :  { %v1061_v5 = vld [vmem:[#allocation5 + $0x2c] ss:$20 sps:$4 sm:$0xff]   ;;  %366 = vmatpush1.bf16.msra.mxu0 %v1059_v3  ;;  %479 = vmatpush1.bf16.msra.mxu1 %v1060_v4  ;;  %v1063_v6 = vld [vmem:[#allocation5 + $0x34] ss:$20 sps:$4 sm:$0xff]   ;;  %v1069_v10 = vld [vmem:[#allocation5 + $0x5c] ss:$20 sps:$4 sm:$0xff]  }
  0x2c   :  { %367 = vmatprep.subr.bf16.mxu0 %v1061_v5  ;;  %480 = vmatprep.subr.bf16.mxu1 %v1063_v6  ;;  %v1067_v9 = vld [vmem:[#allocation5 + $0x54] ss:$20 sps:$4 sm:$0xff]   ;;  %v1072_v12 = vld [vmem:[#allocation5 + $0x58] ss:$20 sps:$4 sm:$0xff]   ;;  %v1073_v13 = vld [vmem:[#allocation5 + $0x7c] ss:$20 sps:$4 sm:$0xff]  }
  0x2d   :  { %v1075_v14 = vld [vmem:[#allocation5 + $0x84] ss:$20 sps:$4 sm:$0xff]   ;;  %v1078_v16 = vld [vmem:[#allocation5 + $0x80] ss:$20 sps:$4 sm:$0xff]   ;;  %v1084_v20 = vld [vmem:[#allocation5 + $0xa8] ss:$20 sps:$4 sm:$0xff]  }
  0x2e   :  { %v1077_v15 = vld [vmem:[#allocation5 + $0x78] ss:$20 sps:$4 sm:$0xff]   ;;  %v1083_v19 = vld [vmem:[#allocation5 + $0xa0] ss:$20 sps:$4 sm:$0xff]   ;;  %v1089_v23 = vld [vmem:[#allocation5 + $0xc8] ss:$20 sps:$4 sm:$0xff]  }
  0x2f   :  { %368 = vmatpush1.bf16.msra.mxu0 %v1065_v7  ;;  %481 = vmatpush1.bf16.msra.mxu1 %v1066_v8  ;;  %v1079_v17 = vld [vmem:[#allocation5 + $0xa4] ss:$20 sps:$4 sm:$0xff]   ;;  %v1081_v18 = vld [vmem:[#allocation5 + $0xac] ss:$20 sps:$4 sm:$0xff]   ;;  %v1087_v22 = vld [vmem:[#allocation5 + $0xd4] ss:$20 sps:$4 sm:$0xff]  }
  0x30   :  { %369 = vmatprep.subr.bf16.mxu0 %v1067_v9  ;;  %482 = vmatprep.subr.bf16.mxu1 %v1069_v10  ;;  %v1085_v21 = vld [vmem:[#allocation5 + $0xcc] ss:$20 sps:$4 sm:$0xff]   ;;  %v1090_v24 = vld [vmem:[#allocation5 + $0xd0] ss:$20 sps:$4 sm:$0xff]   ;;  %v1091_v25 = vld [vmem:[#allocation5 + $0xf4] ss:$20 sps:$4 sm:$0xff]  }
  0x31   :  { %v1093_v26 = vld [vmem:[#allocation5 + $0xfc] ss:$20 sps:$4 sm:$0xff]   ;;  %v1096_v28 = vld [vmem:[#allocation5 + $0xf8] ss:$20 sps:$4 sm:$0xff]   ;;  %v1102_v32 = vld [vmem:[#allocation5 + $0x120] ss:$20 sps:$4 sm:$0xff]  }
  0x32   :  { %v1095_v27 = vld [vmem:[#allocation5 + $0xf0] ss:$20 sps:$4 sm:$0xff]   ;;  %v1101_v31 = vld [vmem:[#allocation5 + $0x118] ss:$20 sps:$4 sm:$0xff]   ;;  %v1108_v36 = vld [vmem:[#allocation5 + $0x60] ss:$20 sps:$4 sm:$0xff]  }
  0x33   :  { %370 = vmatpush1.bf16.msra.mxu0 %v1071_v11  ;;  %483 = vmatpush1.bf16.msra.mxu1 %v1072_v12  ;;  %v1097_v29 = vld [vmem:[#allocation5 + $0x11c] ss:$20 sps:$4 sm:$0xff]   ;;  %v1099_v30 = vld [vmem:[#allocation5 + $0x124] ss:$20 sps:$4 sm:$0xff]   ;;  %v1116_v42 = vld [vmem:[#allocation5 + $0x100] ss:$20 sps:$4 sm:$0xff]  }
  0x34   :  { %371 = vmatprep.subr.bf16.mxu0 %v1073_v13  ;;  %484 = vmatprep.subr.bf16.mxu1 %v1075_v14  ;;  %v1104_v33 = vld [vmem:[#allocation5 + $0x10] ss:$20 sps:$4 sm:$0xff]   ;;  %v1106_v35 = vld [vmem:[#allocation5 + $0x38] ss:$20 sps:$4 sm:$0xff]   ;;  %v1110_v38 = vld [vmem:[#allocation5 + $0x88] ss:$20 sps:$4 sm:$0xff]  }
  0x35   :  { %v1302_v34 = vld [vmem:[#allocation2] sm:$0xff]   ;;  %v1107_v40 = vld [vmem:[#allocation2 + $0x10] sm:$0xff]   ;;  %v1114_v41 = vld [vmem:[#allocation5 + $0xd8] ss:$20 sps:$4 sm:$0xff]   ;;  %s1244_s1 = smov [#allocation8]   ;;  %s1245_s17 = smov [#allocation7]  }
  0x36   :  { %v1112_v39 = vld [vmem:[#allocation5 + $0xb0] ss:$20 sps:$4 sm:$0xff]   ;;  %v1109_v43 = vld [vmem:[#allocation2 + $0x18] sm:$0xff]   ;;  %v1113_v46 = vld [vmem:[#allocation2 + $0x28] sm:$0xff]   ;;  %s865_s16 = sshll.u32 %s1244_s1, 4  ;;  %s853_s18 = sshll.u32 %s1245_s17, 4  ;;  %s1326_s16 = int_to_ptr.vmem [resolvable:$true] %s865_s16  ;;  %s1328_s18 = int_to_ptr.vmem [resolvable:$true] %s853_s18 }
  0x37   :  { %372 = vmatpush1.bf16.msra.mxu0 %v1077_v15  ;;  %485 = vmatpush1.bf16.msra.mxu1 %v1078_v16  ;;  %v1118_v44 = vld [vmem:[#allocation5 + $0x128] ss:$20 sps:$4 sm:$0xff]   ;;  %v1111_v45 = vld [vmem:[#allocation2 + $0x20] sm:$0xff]   ;;  %v1115_v47 = vld [vmem:[#allocation2 + $0x30] sm:$0xff]   ;;  %s1163_s19 = scalar_lea.vmem %s1326_s16, 2048  ;;  %p1168_p3 = scmp.lt.s32.totalorder %s1326_s16, %s1326_s16 }
  0x38   :  { %373 = vmatprep.subr.bf16.mxu0 %v1079_v17  ;;  %486 = vmatprep.subr.bf16.mxu1 %v1081_v18  ;;  %v1117_v48 = vld [vmem:[#allocation2 + $0x38] sm:$0xff]   ;;  %p1164_p2 = scmp.ne.s32.totalorder %s1326_s16, %s1163_s19  ;;  %p1169_p4 = scmp.lt.s32.totalorder %s1163_s19, %s1163_s19 }
  0x3a   :  { %p1170_p5 = por %p1169_p4, %p1168_p3 }
  0x3b   :  { %374 = vmatpush1.bf16.msra.mxu0 %v1083_v19  ;;  %487 = vmatpush1.bf16.msra.mxu1 %v1084_v20 }
  0x3c   :  { %375 = vmatprep.subr.bf16.mxu0 %v1085_v21  ;;  %488 = vmatprep.subr.bf16.mxu1 %v1087_v22  ;;  %p1171_p6 = pnand %p1170_p5, %p1164_p2 }
  0x3f   :  { %376 = vmatpush1.bf16.msra.mxu0 %v1089_v23  ;;  %489 = vmatpush1.bf16.msra.mxu1 %v1090_v24 }
  0x40   :  { %377 = vmatprep.subr.bf16.mxu0 %v1091_v25  ;;  %490 = vmatprep.subr.bf16.mxu1 %v1093_v26 }
  0x43   :  { %378 = vmatpush1.bf16.msra.mxu0 %v1095_v27  ;;  %491 = vmatpush1.bf16.msra.mxu1 %v1096_v28 }
  0x44   :  { %379 = vmatprep.subr.bf16.mxu0 %v1097_v29  ;;  %492 = vmatprep.subr.bf16.mxu1 %v1099_v30 }
  0x47   :  { %380 = vmatpush1.bf16.msra.mxu0 %v1101_v31  ;;  %493 = vmatpush1.bf16.msra.mxu1 %v1102_v32 }
  0x48   :  { %993 = vmatprep.subr.bf16.mxu0 %v1104_v33  ;;  %1025 = vmatprep.subr.bf16.mxu1 %v1104_v33 }
  0x4a   :  { %398 = vmatmul.mubr.bf16.vlgmr.msra.gmra.mrb[0].mxu0 %v1302_v34  ;;  %511 = vmatmul.mubr.bf16.vlgmr.msra.gmra.mrb[0].mxu1 %v1302_v34 }
  0x4b   :  { %994 = vmatpush3.bf16.msra.mxu0 %v1104_v33  ;;  %1033 = vmatpush3.bf16.msra.mxu1 %v1104_v33 }
  0x4c   :  { %407 = vmatprep.mubr.bf16.mxu0 %v1243_v0  ;;  %520 = vmatprep.mubr.bf16.mxu1 %v1243_v0 }
  0x4d   :  { %995 = vmatprep.subr.bf16.mxu0 %v1106_v35  ;;  %1026 = vmatprep.subr.bf16.mxu1 %v1106_v35 }
  0x4f   :  { %996 = vmatpush3.bf16.msra.mxu0 %v1106_v35  ;;  %1034 = vmatpush3.bf16.msra.mxu1 %v1106_v35 }
  0x50   :  { %997 = vmatprep.subr.bf16.mxu0 %v1108_v36  ;;  %1027 = vmatprep.subr.bf16.mxu1 %v1108_v36 }
  0x52   :  { %408 = vmatmul.mubr.bf16.gmra.mrb[4].mxu0 %v1308_v37  ;;  %521 = vmatmul.mubr.bf16.gmra.mrb[4].mxu1 %v1308_v37 }
  0x53   :  { %417 = vmatprep.mubr.bf16.mxu0 %v1243_v0  ;;  %530 = vmatprep.mubr.bf16.mxu1 %v1243_v0 }
  0x54   :  { %998 = vmatpush3.bf16.msra.mxu0 %v1108_v36  ;;  %1035 = vmatpush3.bf16.msra.mxu1 %v1108_v36 }
  0x55   :  { %999 = vmatprep.subr.bf16.mxu0 %v1110_v38  ;;  %1028 = vmatprep.subr.bf16.mxu1 %v1110_v38 }
  0x58   :  { %1000 = vmatpush3.bf16.msra.mxu0 %v1110_v38  ;;  %1036 = vmatpush3.bf16.msra.mxu1 %v1110_v38 }
  0x59   :  { %1001 = vmatprep.subr.bf16.mxu0 %v1112_v39  ;;  %1029 = vmatprep.subr.bf16.mxu1 %v1112_v39 }
  0x5a   :  { %418 = vmatmul.mubr.bf16.gmra.mrb[8].mxu0 %v1107_v40  ;;  %531 = vmatmul.mubr.bf16.gmra.mrb[8].mxu1 %v1107_v40 }
  0x5b   :  { %427 = vmatprep.mubr.bf16.mxu0 %v1243_v0  ;;  %540 = vmatprep.mubr.bf16.mxu1 %v1243_v0 }
  0x5c   :  { %1002 = vmatpush3.bf16.msra.mxu0 %v1112_v39  ;;  %1037 = vmatpush3.bf16.msra.mxu1 %v1112_v39 }
  0x5d   :  { %1003 = vmatprep.subr.bf16.mxu0 %v1114_v41  ;;  %1030 = vmatprep.subr.bf16.mxu1 %v1114_v41 }
  0x60   :  { %1004 = vmatpush3.bf16.msra.mxu0 %v1114_v41  ;;  %1038 = vmatpush3.bf16.msra.mxu1 %v1114_v41 }
  0x61   :  { %1005 = vmatprep.subr.bf16.mxu0 %v1116_v42  ;;  %1031 = vmatprep.subr.bf16.mxu1 %v1116_v42 }
  0x62   :  { %428 = vmatmul.mubr.bf16.gmra.mrb[12].mxu0 %v1109_v43  ;;  %541 = vmatmul.mubr.bf16.gmra.mrb[12].mxu1 %v1109_v43 }
  0x63   :  { %437 = vmatprep.mubr.bf16.mxu0 %v1243_v0  ;;  %550 = vmatprep.mubr.bf16.mxu1 %v1243_v0 }
  0x64   :  { %1006 = vmatpush3.bf16.msra.mxu0 %v1116_v42  ;;  %1039 = vmatpush3.bf16.msra.mxu1 %v1116_v42 }
  0x65   :  { %1007 = vmatprep.subr.bf16.mxu0 %v1118_v44  ;;  %1032 = vmatprep.subr.bf16.mxu1 %v1118_v44 }
  0x68   :  { %1008 = vmatpush3.bf16.msra.mxu0 %v1118_v44  ;;  %1040 = vmatpush3.bf16.msra.mxu1 %v1118_v44 }
  0x6a   :  { %438 = vmatmul.mubr.bf16.gmra.mrb[16].mxu0 %v1111_v45  ;;  %551 = vmatmul.mubr.bf16.gmra.mrb[16].mxu1 %v1111_v45 }
  0x6b   :  { %447 = vmatprep.mubr.bf16.mxu0 %v1243_v0  ;;  %560 = vmatprep.mubr.bf16.mxu1 %v1243_v0 }
  0x72   :  { %448 = vmatmul.mubr.bf16.gmra.mrb[20].mxu0 %v1113_v46  ;;  %561 = vmatmul.mubr.bf16.gmra.mrb[20].mxu1 %v1113_v46 }
  0x73   :  { %457 = vmatprep.mubr.bf16.mxu0 %v1243_v0  ;;  %570 = vmatprep.mubr.bf16.mxu1 %v1243_v0 }
  0x7a   :  { %458 = vmatmul.mubr.bf16.gmra.mrb[24].mxu0 %v1115_v47  ;;  %571 = vmatmul.mubr.bf16.gmra.mrb[24].mxu1 %v1115_v47 }
  0x7b   :  { %467 = vmatprep.mubr.bf16.mxu0 %v1243_v0  ;;  %580 = vmatprep.mubr.bf16.mxu1 %v1243_v0 }
  0x82   :  { %468 = vmatmul.mubr.bf16.gmra.mrb[28].mxu0 %v1117_v48  ;;  %581 = vmatmul.mubr.bf16.gmra.mrb[28].mxu1 %v1117_v48 }
  0x83   :  { %1009 = vmatprep.mubr.bf16.mxu0 %v1302_v34  ;;  %1017 = vmatprep.mubr.bf16.mxu1 %v1111_v45 }
  0x8a   :  { %1010 = vmatmul.mubr.bf16.vlgmr.msra.gmra.mrb[32].mxu0 %v1308_v37  ;;  %1018 = vmatmul.mubr.bf16.vlgmr.msra.gmra.mrb[32].mxu1 %v1113_v46 }
  0x8b   :  { %1013 = vmatprep.mubr.bf16.mxu0 %v1107_v40  ;;  %1021 = vmatprep.mubr.bf16.mxu1 %v1115_v47 }
  0x92   :  { %1014 = vmatmul.mubr.bf16.gmra.mrb[36].mxu0 %v1109_v43  ;;  %1022 = vmatmul.mubr.bf16.gmra.mrb[36].mxu1 %v1117_v48 }
 0x11d   :  { %v399_v49 = vpop.f32.mrb[0].mxu0  ;;  %v512_v50 = vpop.f32.mrb[0].mxu1 }
 0x11e   :  { %800 = vst [vmem:[#allocation8] sm:$0xff] %v512_v50  ;;  %v401_v51 = vpop.f32.mrb[1].mxu0  ;;  %v514_v52 = vpop.f32.mrb[1].mxu1 }
 0x11f   :  { %v961_v53 = vpack.c.bf16 %v401_v51, %v399_v49  ;;  %816 = vst [vmem:[#allocation10] sm:$0xff] %v514_v52  ;;  %v403_v54 = vpop.f32.mrb[2].mxu0  ;;  %v516_v55 = vpop.f32.mrb[2].mxu1 }
 0x120   :  { %801 = vst [vmem:[#allocation8 + $0x8] sm:$0xff] %v516_v55  ;;  %v405_v56 = vpop.f32.mrb[3].mxu0  ;;  %v518_v57 = vpop.f32.mrb[3].mxu1 }
 0x121   :  { %784 = vst [vmem:[#allocation7] sm:$0xff] %v961_v53  ;;  %v962_v58 = vpack.c.bf16 %v405_v56, %v403_v54  ;;  %818 = vst [vmem:[#allocation10 + $0x10] sm:$0xff] %v518_v57 }
 0x123   :  { %785 = vst [vmem:[#allocation7 + $0x8] sm:$0xff] %v962_v58 }
 0x125   :  { %v409_v59 = vpop.f32.mrb[4].mxu0  ;;  %v522_v60 = vpop.f32.mrb[4].mxu1 }
 0x126   :  { %802 = vst [vmem:[#allocation8 + $0x10] sm:$0xff] %v522_v60  ;;  %v411_v61 = vpop.f32.mrb[5].mxu0  ;;  %v524_v62 = vpop.f32.mrb[5].mxu1 }
 0x127   :  { %v963_v63 = vpack.c.bf16 %v411_v61, %v409_v59  ;;  %820 = vst [vmem:[#allocation10 + $0x20] sm:$0xff] %v524_v62  ;;  %v413_v0 = vpop.f32.mrb[6].mxu0  ;;  %v526_v1 = vpop.f32.mrb[6].mxu1 }
 0x128   :  { %803 = vst [vmem:[#allocation8 + $0x18] sm:$0xff] %v526_v1  ;;  %v415_v2 = vpop.f32.mrb[7].mxu0  ;;  %v528_v3 = vpop.f32.mrb[7].mxu1 }
 0x129   :  { %786 = vst [vmem:[#allocation7 + $0x10] sm:$0xff] %v963_v63  ;;  %v964_v4 = vpack.c.bf16 %v415_v2, %v413_v0  ;;  %822 = vst [vmem:[#allocation10 + $0x30] sm:$0xff] %v528_v3 }
 0x12b   :  { %787 = vst [vmem:[#allocation7 + $0x18] sm:$0xff] %v964_v4 }
 0x12d   :  { %v419_v5 = vpop.f32.mrb[8].mxu0  ;;  %v532_v6 = vpop.f32.mrb[8].mxu1 }
 0x12e   :  { %804 = vst [vmem:[#allocation8 + $0x20] sm:$0xff] %v532_v6  ;;  %v421_v7 = vpop.f32.mrb[9].mxu0  ;;  %v534_v8 = vpop.f32.mrb[9].mxu1 }
 0x12f   :  { %v965_v9 = vpack.c.bf16 %v421_v7, %v419_v5  ;;  %824 = vst [vmem:[#allocation10 + $0x40] sm:$0xff] %v534_v8  ;;  %v423_v10 = vpop.f32.mrb[10].mxu0  ;;  %v536_v11 = vpop.f32.mrb[10].mxu1 }
 0x130   :  { %805 = vst [vmem:[#allocation8 + $0x28] sm:$0xff] %v536_v11  ;;  %v425_v12 = vpop.f32.mrb[11].mxu0  ;;  %v538_v13 = vpop.f32.mrb[11].mxu1 }
 0x131   :  { %788 = vst [vmem:[#allocation7 + $0x20] sm:$0xff] %v965_v9  ;;  %v966_v14 = vpack.c.bf16 %v425_v12, %v423_v10  ;;  %826 = vst [vmem:[#allocation10 + $0x50] sm:$0xff] %v538_v13 }
 0x133   :  { %789 = vst [vmem:[#allocation7 + $0x28] sm:$0xff] %v966_v14 }
 0x135   :  { %v429_v15 = vpop.f32.mrb[12].mxu0  ;;  %v542_v16 = vpop.f32.mrb[12].mxu1 }
 0x136   :  { %806 = vst [vmem:[#allocation8 + $0x30] sm:$0xff] %v542_v16  ;;  %v431_v17 = vpop.f32.mrb[13].mxu0  ;;  %v544_v18 = vpop.f32.mrb[13].mxu1 }
 0x137   :  { %v967_v19 = vpack.c.bf16 %v431_v17, %v429_v15  ;;  %828 = vst [vmem:[#allocation10 + $0x60] sm:$0xff] %v544_v18  ;;  %v433_v20 = vpop.f32.mrb[14].mxu0  ;;  %v546_v21 = vpop.f32.mrb[14].mxu1 }
 0x138   :  { %807 = vst [vmem:[#allocation8 + $0x38] sm:$0xff] %v546_v21  ;;  %v435_v22 = vpop.f32.mrb[15].mxu0  ;;  %v548_v23 = vpop.f32.mrb[15].mxu1 }
 0x139   :  { %790 = vst [vmem:[#allocation7 + $0x30] sm:$0xff] %v967_v19  ;;  %v968_v24 = vpack.c.bf16 %v435_v22, %v433_v20  ;;  %830 = vst [vmem:[#allocation10 + $0x70] sm:$0xff] %v548_v23 }
 0x13b   :  { %791 = vst [vmem:[#allocation7 + $0x38] sm:$0xff] %v968_v24 }
 0x13d   :  { %v439_v25 = vpop.f32.mrb[16].mxu0  ;;  %v552_v26 = vpop.f32.mrb[16].mxu1 }
 0x13e   :  { %808 = vst [vmem:[#allocation8 + $0x40] sm:$0xff] %v552_v26  ;;  %v441_v27 = vpop.f32.mrb[17].mxu0  ;;  %v554_v28 = vpop.f32.mrb[17].mxu1 }
 0x13f   :  { %v969_v29 = vpack.c.bf16 %v441_v27, %v439_v25  ;;  %832 = vst [vmem:[#allocation10 + $0x80] sm:$0xff] %v554_v28  ;;  %v443_v30 = vpop.f32.mrb[18].mxu0  ;;  %v556_v31 = vpop.f32.mrb[18].mxu1 }
 0x140   :  { %809 = vst [vmem:[#allocation8 + $0x48] sm:$0xff] %v556_v31  ;;  %v445_v32 = vpop.f32.mrb[19].mxu0  ;;  %v558_v33 = vpop.f32.mrb[19].mxu1 }
 0x141   :  { %792 = vst [vmem:[#allocation7 + $0x40] sm:$0xff] %v969_v29  ;;  %v970_v34 = vpack.c.bf16 %v445_v32, %v443_v30  ;;  %834 = vst [vmem:[#allocation10 + $0x90] sm:$0xff] %v558_v33 }
 0x143   :  { %793 = vst [vmem:[#allocation7 + $0x48] sm:$0xff] %v970_v34 }
 0x145   :  { %v449_v35 = vpop.f32.mrb[20].mxu0  ;;  %v562_v36 = vpop.f32.mrb[20].mxu1 }
 0x146   :  { %810 = vst [vmem:[#allocation8 + $0x50] sm:$0xff] %v562_v36  ;;  %v451_v37 = vpop.f32.mrb[21].mxu0  ;;  %v564_v38 = vpop.f32.mrb[21].mxu1 }
 0x147   :  { %v971_v39 = vpack.c.bf16 %v451_v37, %v449_v35  ;;  %836 = vst [vmem:[#allocation10 + $0xa0] sm:$0xff] %v564_v38  ;;  %v453_v40 = vpop.f32.mrb[22].mxu0  ;;  %v566_v41 = vpop.f32.mrb[22].mxu1 }
 0x148   :  { %811 = vst [vmem:[#allocation8 + $0x58] sm:$0xff] %v566_v41  ;;  %v455_v42 = vpop.f32.mrb[23].mxu0  ;;  %v568_v43 = vpop.f32.mrb[23].mxu1 }
 0x149   :  { %794 = vst [vmem:[#allocation7 + $0x50] sm:$0xff] %v971_v39  ;;  %v972_v44 = vpack.c.bf16 %v455_v42, %v453_v40  ;;  %838 = vst [vmem:[#allocation10 + $0xb0] sm:$0xff] %v568_v43 }
 0x14b   :  { %795 = vst [vmem:[#allocation7 + $0x58] sm:$0xff] %v972_v44 }
 0x14d   :  { %v459_v45 = vpop.f32.mrb[24].mxu0  ;;  %v572_v46 = vpop.f32.mrb[24].mxu1 }
 0x14e   :  { %812 = vst [vmem:[#allocation8 + $0x60] sm:$0xff] %v572_v46  ;;  %v461_v47 = vpop.f32.mrb[25].mxu0  ;;  %v574_v48 = vpop.f32.mrb[25].mxu1 }
 0x14f   :  { %v973_v49 = vpack.c.bf16 %v461_v47, %v459_v45  ;;  %840 = vst [vmem:[#allocation10 + $0xc0] sm:$0xff] %v574_v48  ;;  %v463_v50 = vpop.f32.mrb[26].mxu0  ;;  %v576_v51 = vpop.f32.mrb[26].mxu1 }
 0x150   :  { %813 = vst [vmem:[#allocation8 + $0x68] sm:$0xff] %v576_v51  ;;  %v465_v52 = vpop.f32.mrb[27].mxu0  ;;  %v578_v53 = vpop.f32.mrb[27].mxu1 }
 0x151   :  { %796 = vst [vmem:[#allocation7 + $0x60] sm:$0xff] %v973_v49  ;;  %v974_v54 = vpack.c.bf16 %v465_v52, %v463_v50  ;;  %842 = vst [vmem:[#allocation10 + $0xd0] sm:$0xff] %v578_v53 }
 0x153   :  { %797 = vst [vmem:[#allocation7 + $0x68] sm:$0xff] %v974_v54 }
 0x155   :  { %v469_v55 = vpop.f32.mrb[28].mxu0  ;;  %v582_v56 = vpop.f32.mrb[28].mxu1 }
 0x156   :  { %814 = vst [vmem:[#allocation8 + $0x70] sm:$0xff] %v582_v56  ;;  %v471_v57 = vpop.f32.mrb[29].mxu0  ;;  %v584_v58 = vpop.f32.mrb[29].mxu1 }
 0x157   :  { %v975_v59 = vpack.c.bf16 %v471_v57, %v469_v55  ;;  %844 = vst [vmem:[#allocation10 + $0xe0] sm:$0xff] %v584_v58  ;;  %v473_v60 = vpop.f32.mrb[30].mxu0  ;;  %v586_v61 = vpop.f32.mrb[30].mxu1 }
 0x158   :  { %815 = vst [vmem:[#allocation8 + $0x78] sm:$0xff] %v586_v61  ;;  %v475_v62 = vpop.f32.mrb[31].mxu0  ;;  %v588_v63 = vpop.f32.mrb[31].mxu1 }
 0x159   :  { %798 = vst [vmem:[#allocation7 + $0x70] sm:$0xff] %v975_v59  ;;  %v976_v0 = vpack.c.bf16 %v475_v62, %v473_v60  ;;  %846 = vst [vmem:[#allocation10 + $0xf0] sm:$0xff] %v588_v63 }
 0x15a   :  { %1174 = shalt.err (!%p1171_p6)
}
 0x15b   :  { %s1175_s22 = scalar_lea.hbm %s1379_s3, 2048 }
 0x15c   :  { %p1176_p7 = scmp.ne.s32.totalorder %s1379_s3, %s1175_s22  ;;  %p1179_p8 = scmp.lt.u32.totalorder %s1175_s22, %s1379_s3 }
 0x15e   :  { %p1181_p9 = pnand %p1179_p8, %p1176_p7 }
 0x160   :  { %1184 = shalt.err (!%p1181_p9)
}
 0x161   :  { %s1246_s27 = smov 128   ;;  %s1247_s28 = smov 8   ;;  %799 = vst [vmem:[#allocation7 + $0x78] sm:$0xff] %v976_v0 }
 0x162   :  { %871 = dma.vmem_to_hbm [thread:$0]  %s1326_s16, 2048, %s1379_s3, [#allocation9], %s1246_s27, %s1246_s27, %s1247_s28  }
 0x163   :  { %s1185_s5 = scalar_lea.vmem %s1328_s18, 2048  ;;  %p1190_p11 = scmp.lt.s32.totalorder %s1328_s18, %s1328_s18 }
 0x164   :  { %p1186_p10 = scmp.ne.s32.totalorder %s1328_s18, %s1185_s5  ;;  %p1191_p12 = scmp.lt.s32.totalorder %s1185_s5, %s1185_s5 }
 0x166   :  { %p1192_p13 = por %p1191_p12, %p1190_p11 }
 0x168   :  { %p1193_p0 = pnand %p1192_p13, %p1186_p10 }
 0x16a   :  { %1196 = shalt.err (!%p1193_p0)
}
 0x16b   :  { %s1197_s8 = scalar_lea.hbm %s1378_s2, 2048 }
 0x16c   :  { %p1198_p1 = scmp.ne.s32.totalorder %s1378_s2, %s1197_s8  ;;  %p1201_p2 = scmp.lt.u32.totalorder %s1197_s8, %s1378_s2 }
 0x16e   :  { %p1203_p3 = pnand %p1201_p2, %p1198_p1 }
 0x170   :  { %1206 = shalt.err (!%p1203_p3)
}
 0x171   :  { %859 = dma.vmem_to_hbm [thread:$0]  %s1328_s18, 2048, %s1378_s2, [#allocation4], %s1246_s27, %s1246_s27, %s1247_s28   ;;  %v1011_v1 = vpop.f32.mrb[32].mxu0  ;;  %v1019_v2 = vpop.f32.mrb[32].mxu1 }
 0x172   :  { %821 = vst [vmem:[#allocation10 + $0x28] sm:$0xff] %v1011_v1  ;;  %837 = vst [vmem:[#allocation10 + $0xa8] sm:$0xff] %v1019_v2  ;;  %v625_v3 = vpop.f32.mrb[33].mxu0  ;;  %v657_v4 = vpop.f32.mrb[33].mxu1  ;;  %s1248_s13 = smov [#allocation10]  }
 0x173   :  { %817 = vst [vmem:[#allocation10 + $0x8] sm:$0xff] %v625_v3  ;;  %833 = vst [vmem:[#allocation10 + $0x88] sm:$0xff] %v657_v4  ;;  %v1012_v5 = vpop.f32.mrb[34].mxu0  ;;  %v1020_v6 = vpop.f32.mrb[34].mxu1  ;;  %s877_s14 = sshll.u32 %s1248_s13, 4  ;;  %s878_s14 = int_to_ptr.vmem [resolvable:$true] %s877_s14 }
 0x174   :  { %823 = vst [vmem:[#allocation10 + $0x38] sm:$0xff] %v1012_v5  ;;  %839 = vst [vmem:[#allocation10 + $0xb8] sm:$0xff] %v1020_v6  ;;  %v628_v7 = vpop.f32.mrb[35].mxu0  ;;  %v660_v8 = vpop.f32.mrb[35].mxu1  ;;  %s1207_s2 = scalar_lea.vmem %s878_s14, 4096  ;;  %p1212_p5 = scmp.lt.s32.totalorder %s878_s14, %s878_s14 }
 0x175   :  { %819 = vst [vmem:[#allocation10 + $0x18] sm:$0xff] %v628_v7  ;;  %835 = vst [vmem:[#allocation10 + $0x98] sm:$0xff] %v660_v8  ;;  %v1015_v9 = vpop.f32.mrb[36].mxu0  ;;  %v1023_v10 = vpop.f32.mrb[36].mxu1  ;;  %p1208_p4 = scmp.ne.s32.totalorder %s878_s14, %s1207_s2  ;;  %p1213_p6 = scmp.lt.s32.totalorder %s1207_s2, %s1207_s2 }
 0x176   :  { %829 = vst [vmem:[#allocation10 + $0x68] sm:$0xff] %v1015_v9  ;;  %845 = vst [vmem:[#allocation10 + $0xe8] sm:$0xff] %v1023_v10  ;;  %v641_v11 = vpop.f32.mrb[37].mxu0  ;;  %v673_v12 = vpop.f32.mrb[37].mxu1 }
 0x177   :  { %825 = vst [vmem:[#allocation10 + $0x48] sm:$0xff] %v641_v11  ;;  %841 = vst [vmem:[#allocation10 + $0xc8] sm:$0xff] %v673_v12  ;;  %v1016_v13 = vpop.f32.mrb[38].mxu0  ;;  %v1024_v14 = vpop.f32.mrb[38].mxu1  ;;  %p1214_p7 = por %p1213_p6, %p1212_p5 }
 0x178   :  { %831 = vst [vmem:[#allocation10 + $0x78] sm:$0xff] %v1016_v13  ;;  %847 = vst [vmem:[#allocation10 + $0xf8] sm:$0xff] %v1024_v14  ;;  %v644_v15 = vpop.f32.mrb[39].mxu0  ;;  %v676_v16 = vpop.f32.mrb[39].mxu1 }
 0x179   :  { %827 = vst [vmem:[#allocation10 + $0x58] sm:$0xff] %v644_v15  ;;  %843 = vst [vmem:[#allocation10 + $0xd8] sm:$0xff] %v676_v16  ;;  %p1215_p8 = pnand %p1214_p7, %p1208_p4 }
 0x17b   :  { %1218 = shalt.err (!%p1215_p8)
}
 0x17c   :  { %s1219_s16 = scalar_lea.hbm %s1380_s4, 4096 }
 0x17d   :  { %p1220_p9 = scmp.ne.s32.totalorder %s1380_s4, %s1219_s16  ;;  %p1223_p10 = scmp.lt.u32.totalorder %s1219_s16, %s1380_s4 }
 0x17f   :  { %p1225_p11 = pnand %p1223_p10, %p1220_p9 }
 0x181   :  { %1228 = shalt.err (!%p1225_p11)
}
 0x182   :  { %s1249_s21 = smov 256   ;;  %s1250_s22 = smov 16  }
 0x183   :  { %883 = dma.vmem_to_hbm [thread:$0]  %s878_s14, 4096, %s1380_s4, [#allocation9], %s1249_s21, %s1249_s21, %s1250_s22  }
 0x184   :  { %1233 = dma.done.wait [#allocation4], 2048  }
 0x185   :  { %1234 = vsyncadd [#allocation4], 4294965248 }
 0x186   :  { %1235 = dma.done.wait [#allocation9], 6144  }
 0x187   :  { %1236 = vsyncadd [#allocation9], 4294961152 }
 0x188   :  { %893 = vsyncpa [#allocation3], 1 }
 0x189   :  { %894 = vsyncpa [#allocation6], 1 }
 0x18a   :  { %895 = vsyncpa [#allocation4], 1 }
 0x18b   :  { %896 = vsyncpa [#allocation9], 1 }

</bundles_post_ra>
